<compile_context>
chip_gen: v7x
topology: tpu7x:2x2x1
jax: 0.10.0
libtpu: 0.0.40
codegen_flags: <defaults>
</compile_context>

<pallas_src>
import functools

import jax
import jax.numpy as jnp
from jax.experimental import pallas as pl
from jax.experimental.pallas import tpu as pltpu

LANES = 128
TILE_ROWS = 4096      # 4096 x 128 x 4B = 2 MiB per f32 input tile (amortizes step cost)
ACC_ROWS = 8          # vreg-sized resident accumulator (8, 128) f32


def _stable_bce(x, tgt):
    """Numerically stable BCEWithLogits (matches torch):
       max(x, 0) - x*t + log1p(exp(-|x|))."""
    x = x.astype(jnp.float32)
    tgt = tgt.astype(jnp.float32)
    return jnp.maximum(x, 0.0) - x * tgt + jnp.log1p(jnp.exp(-jnp.abs(x)))


def _bce_tile_kernel(x_ref, t_ref, o_ref, *, rows, tile_r, tiles):
    """Accumulate stable BCE-with-logits terms of one (tile_r, 128) tile into the
    resident vreg-sized (ACC_ROWS, 128) f32 output block (used as the accumulator)."""
    step = pl.program_id(0)

    @pl.when(step == 0)
    def _init():
        o_ref[...] = jnp.zeros_like(o_ref)

    x = x_ref[...].astype(jnp.float32)       # upcast in-register (bf16 inputs OK too)
    tgt = t_ref[...].astype(jnp.float32)
    loss = jnp.maximum(x, 0.0) - x * tgt + jnp.log1p(jnp.exp(-jnp.abs(x)))

    def _accumulate(l):
        if tile_r % ACC_ROWS == 0:
            # Layout-preserving sublane regrouping; sum over the leading axis is a
            # chain of vreg adds (VPU), landing directly on the (8, 128) accumulator.
            o_ref[...] += l.reshape(tile_r // ACC_ROWS, ACC_ROWS, LANES).sum(axis=0)
        else:
            # Small single-tile case (tile_r == rows < TILE_ROWS, not a multiple of 8).
            o_ref[0:1, :] += jnp.sum(l, axis=0, keepdims=True)

    if rows % tile_r == 0:
        # All tiles are fully valid: pure unmasked hot path.
        _accumulate(loss)
    else:
        @pl.when(step < tiles - 1)
        def _interior():
            _accumulate(loss)

        @pl.when(step == tiles - 1)
        def _tail():
            # Rows past `rows` in the last (partial) block carry undefined data from
            # the pipeline; mask them with a cheap row-index compare (no global flat
            # index -> no int32-overflow edge near 2^31 elements).
            valid_rows = rows - step * tile_r
            ridx = jax.lax.broadcasted_iota(jnp.int32, (tile_r, LANES), 0)
            _accumulate(jnp.where(ridx < valid_rows, loss, 0.0))


def _bce_with_logits_mean(inputs, targets, cast_targets_bf16=True):
    """Mean of elementwise BCE-with-logits over all elements via a Pallas kernel."""
    n = inputs.size
    flat_x = inputs.reshape(-1)
    flat_t = targets.reshape(-1)

    if cast_targets_bf16 and flat_t.dtype == jnp.float32:
        # Segmentation targets are {0,1} which bf16 represents exactly; halves the
        # target HBM stream (and fuses with the target producer in a real train step).
        flat_t = flat_t.astype(jnp.bfloat16)

    n_main = (n // LANES) * LANES            # lane-aligned prefix handled by the kernel
    rows = n_main // LANES

    total = jnp.float32(0.0)

    if rows > 0:
        # Free views (prefix slice + reshape) -- no jnp.pad / full-array copy pass.
        x2d = flat_x[:n_main].reshape(rows, LANES)
        t2d = flat_t[:n_main].reshape(rows, LANES)

        tile_r = TILE_ROWS if rows >= TILE_ROWS else rows   # block dim <= array dim
        tiles = pl.cdiv(rows, tile_r)

        kernel = functools.partial(
            _bce_tile_kernel, rows=rows, tile_r=tile_r, tiles=tiles)

        def _in_index(t):
            return (t, 0)

        x_tile_bytes = tile_r * LANES * x2d.dtype.itemsize
        t_tile_bytes = tile_r * LANES * t2d.dtype.itemsize
        # 2x double-buffered inputs + f32 temporaries + accumulator, with headroom.
        vmem_limit = int(min(48 << 20,
                             max(16 << 20,
                                 8 * (x_tile_bytes + t_tile_bytes) + (8 << 20))))

        cost = pl.CostEstimate(
            flops=5 * n_main,
            transcendentals=2 * n_main,
            bytes_accessed=n_main * (x2d.dtype.itemsize + t2d.dtype.itemsize)
                           + ACC_ROWS * LANES * 4,
        )

        partial_acc = pl.pallas_call(
            kernel,
            out_shape=jax.ShapeDtypeStruct((ACC_ROWS, LANES), jnp.float32),
            grid=(tiles,),
            in_specs=[
                pl.BlockSpec((tile_r, LANES), _in_index),
                pl.BlockSpec((tile_r, LANES), _in_index),
            ],
            out_specs=pl.BlockSpec((ACC_ROWS, LANES), lambda t: (0, 0)),
            compiler_params=pltpu.CompilerParams(
                dimension_semantics=("arbitrary",),
                vmem_limit_bytes=vmem_limit,
            ),
            cost_estimate=cost,
        )(x2d, t2d)

        # Single tiny cross-lane reduction of the vreg-sized accumulator.
        total = jnp.sum(partial_acc)

    if n - n_main:
        # <=127-element tail handled in plain JAX (negligible; avoids any padding copy).
        total = total + jnp.sum(_stable_bce(flat_x[n_main:], flat_t[n_main:]))

    return total / jnp.float32(n)


def balanced_loss(inputs, targets, bce_weight=0.5, boundary_weight=0.5):
    """JAX/Pallas equivalent of BalancedLoss.forward (NCHW logits + targets)."""
    bce = _bce_with_logits_mean(inputs, targets)
    # BoundaryLossFunction.forward returns a constant 0.0 tensor in the reference.
    boundary = jnp.float32(0.0)
    return bce_weight * bce + boundary_weight * boundary


if __name__ == "__main__":
    key = jax.random.PRNGKey(0)
    k1, k2 = jax.random.split(key)
    B, C, H, W = 2, 4, 16, 16
    inputs = jax.random.normal(k1, (B, C, H, W), dtype=jnp.float32)   # logits
    targets = (jax.random.uniform(k2, (B, C, H, W)) > 0.5).astype(jnp.float32)

    out = balanced_loss(inputs, targets)
    jax.block_until_ready(out)

    # Pure-JAX reference check (BCEWithLogitsLoss, mean reduction, 0.5 weight).
    ref = 0.5 * jnp.mean(
        jnp.maximum(inputs, 0.0)
        - inputs * targets
        + jnp.log1p(jnp.exp(-jnp.abs(inputs)))
    )
    assert jnp.allclose(out, ref, atol=1e-5, rtol=1e-5), (out, ref)
    print("KERNEL_OK")
</pallas_src>

<mosaic_0001>
module attributes {stable_mosaic.version = 11 : i64} {
  func.func @_bce_tile_kernel(%arg0: i32, %arg1: memref<16x128xf32, #tpu.memory_space<vmem>>, %arg2: memref<16x128xbf16, #tpu.memory_space<vmem>>, %arg3: memref<8x128xf32, #tpu.memory_space<vmem>>) attributes {dimension_semantics = [#tpu.dimension_semantics<arbitrary>], iteration_bounds = array<i64: 1>, scalar_prefetch = 0 : i64, scratch_operands = 0 : i64, tpu.core_type = #tpu.core_type<tc>, window_params = [{transform_indices = @transform_0, window_bounds = array<i64: 16, 128>}, {transform_indices = @transform_1, window_bounds = array<i64: 16, 128>}, {pipeline_mode = #tpu.pipeline_mode<synchronous>, transform_indices = @transform_2, window_bounds = array<i64: 8, 128>}]} {
    %c0_i32 = arith.constant 0 : i32
    %0 = arith.cmpi eq, %arg0, %c0_i32 : i32
    %1 = arith.extui %0 : i1 to i32
    %c0_i32_0 = arith.constant 0 : i32
    %2 = arith.cmpi ne, %1, %c0_i32_0 : i32
    scf.if %2 {
      %cst_10 = arith.constant 0.000000e+00 : f32
      %21 = vector.broadcast %cst_10 : f32 to vector<8x128xf32>
      %c0_11 = arith.constant 0 : index
      %c0_12 = arith.constant 0 : index
      %22 = vector.load %arg3[%c0_11, %c0_12] : memref<8x128xf32, #tpu.memory_space<vmem>>, vector<8x128xf32>
      tpu.vector_store %arg3[%c0_11, %c0_12], %21 {strides = array<i32>} : memref<8x128xf32, #tpu.memory_space<vmem>>, vector<8x128xf32>,
    } else {
    }
    %c0 = arith.constant 0 : index
    %c0_1 = arith.constant 0 : index
    %3 = vector.load %arg1[%c0, %c0_1] : memref<16x128xf32, #tpu.memory_space<vmem>>, vector<16x128xf32>
    %c0_2 = arith.constant 0 : index
    %c0_3 = arith.constant 0 : index
    %4 = vector.load %arg2[%c0_2, %c0_3] : memref<16x128xbf16, #tpu.memory_space<vmem>>, vector<16x128xbf16>
    %5 = arith.extf %4 : vector<16x128xbf16> to vector<16x128xf32>
    %cst = arith.constant 0.000000e+00 : f32
    %6 = vector.broadcast %cst : f32 to vector<16x128xf32>
    %7 = arith.maximumf %3, %6 : vector<16x128xf32>
    %8 = arith.mulf %3, %5 : vector<16x128xf32>
    %9 = arith.subf %7, %8 : vector<16x128xf32>
    %10 = math.absf %3 : vector<16x128xf32>
    %cst_4 = arith.constant 0.000000e+00 : f32
    %11 = vector.broadcast %cst_4 : f32 to vector<16x128xf32>
    %12 = arith.subf %11, %10 : vector<16x128xf32>
    %13 = math.exp %12 : vector<16x128xf32>
    %14 = math.log1p %13 : vector<16x128xf32>
    %15 = arith.addf %9, %14 : vector<16x128xf32>
    %c0_5 = arith.constant 0 : index
    %c0_6 = arith.constant 0 : index
    %16 = vector.load %arg3[%c0_5, %c0_6] : memref<8x128xf32, #tpu.memory_space<vmem>>, vector<8x128xf32>
    %17 = vector.shape_cast %15 : vector<16x128xf32> to vector<2x8x128xf32>
    %cst_7 = arith.constant dense<0.000000e+00> : vector<8x128xf32>
    %18 = vector.multi_reduction <add>, %17, %cst_7 [0] : vector<2x8x128xf32> to vector<8x128xf32>
    %19 = arith.addf %16, %18 : vector<8x128xf32>
    %c0_8 = arith.constant 0 : index
    %c0_9 = arith.constant 0 : index
    %20 = vector.load %arg3[%c0_8, %c0_9] : memref<8x128xf32, #tpu.memory_space<vmem>>, vector<8x128xf32>
    tpu.vector_store %arg3[%c0_8, %c0_9], %19 {strides = array<i32>} : memref<8x128xf32, #tpu.memory_space<vmem>>, vector<8x128xf32>,
    return
  }
  func.func @transform_0(%arg0: i32) -> (i32, i32) {
    %c0_i32 = arith.constant 0 : i32
    %c0_i32_0 = arith.constant 0 : i32
    return %arg0, %c0_i32 : i32, i32
  }
  func.func @transform_1(%arg0: i32) -> (i32, i32) {
    %c0_i32 = arith.constant 0 : i32
    %c0_i32_0 = arith.constant 0 : i32
    return %arg0, %c0_i32 : i32, i32
  }
  func.func @transform_2(%arg0: i32) -> (i32, i32) {
    %c0_i32 = arith.constant 0 : i32
    %c0_i32_0 = arith.constant 0 : i32
    %c0_i32_1 = arith.constant 0 : i32
    return %c0_i32, %c0_i32_0 : i32, i32
  }
}

</mosaic_0001>

<bundles_post_ra>
// kernel: tpu_custom_call.1
= control target key start
LH: loop header
LB: loop body
LE: loop exit
PB: predicated region body
PF: predicated region fallthrough
CT: control target
= control target key end

     0   :  { %7 = vsyncpa [#allocation3], 0  ;;  %s255_s0 = inlined_call_operand.hbm [shape: f32[16,128], index: 0, kind: input, shape index: {}]   ;;  %s256_s1 = inlined_call_operand.hbm [shape: bf16[16,128], index: 1, kind: input, shape index: {}]   ;;  %s257_s2 = inlined_call_operand.hbm [shape: f32[8,128], index: 2, kind: output, shape index: {}]  }
   0x1   :  { %8 = vsyncpa [#allocation6], 0 }
   0x2   :  { %9 = vsyncpa [#allocation4], 0  ;;  %s197_s9 = smov [#allocation2]   ;;  %s125_s13 = scalar_lea.hbm %s255_s0, 256 }
   0x3   :  { %s15_s10 = sshll.u32 %s197_s9, 4  ;;  %p126_p0 = scmp.ne.s32.totalorder %s255_s0, %s125_s13  ;;  %s16_s10 = int_to_ptr.vmem [resolvable:$true] %s15_s10 }
   0x4   :  { %p129_p1 = scmp.lt.u32.totalorder %s125_s13, %s255_s0 }
   0x6   :  { %p131_p2 = pnand %p129_p1, %p126_p0 }
   0x8   :  { %134 = shalt.err (!%p131_p2)
}
   0x9   :  { %s135_s18 = scalar_lea.vmem %s16_s10, 256  ;;  %p140_p4 = scmp.lt.s32.totalorder %s16_s10, %s16_s10 }
   0xa   :  { %p136_p3 = scmp.ne.s32.totalorder %s16_s10, %s135_s18  ;;  %p141_p5 = scmp.lt.s32.totalorder %s135_s18, %s135_s18 }
   0xc   :  { %p142_p6 = por %p141_p5, %p140_p4 }
   0xe   :  { %p143_p7 = pnand %p142_p6, %p136_p3 }
  0x10   :  { %146 = shalt.err (!%p143_p7)
}
  0x11   :  { %s198_s19 = smov 128   ;;  %s199_s20 = smov 8  }
  0x12   :  { %21 = dma.hbm_to_vmem [thread:$0]  %s255_s0, 256, %s16_s10, [#allocation3], %s198_s19, %s198_s19, %s199_s20  }
  0x13   :  { %s200_s23 = smov [#allocation5]   ;;  %s147_s27 = scalar_lea.hbm %s256_s1, 128 }
  0x14   :  { %s27_s24 = sshll.u32 %s200_s23, 4  ;;  %p148_p8 = scmp.ne.s32.totalorder %s256_s1, %s147_s27  ;;  %s28_s24 = int_to_ptr.vmem [resolvable:$true] %s27_s24 }
  0x15   :  { %p151_p9 = scmp.lt.u32.totalorder %s147_s27, %s256_s1 }
  0x17   :  { %p153_p10 = pnand %p151_p9, %p148_p8 }
  0x19   :  { %156 = shalt.err (!%p153_p10)
}
  0x1a   :  { %s157_s4 = scalar_lea.vmem %s28_s24, 128  ;;  %p162_p12 = scmp.lt.s32.totalorder %s28_s24, %s28_s24 }
  0x1b   :  { %p158_p11 = scmp.ne.s32.totalorder %s28_s24, %s157_s4  ;;  %p163_p13 = scmp.lt.s32.totalorder %s157_s4, %s157_s4 }
  0x1d   :  { %p164_p0 = por %p163_p13, %p162_p12 }
  0x1f   :  { %p165_p1 = pnand %p164_p0, %p158_p11 }
  0x21   :  { %168 = shalt.err (!%p165_p1)
}
  0x22   :  { %s201_s0 = smov 64   ;;  %s202_s5 = smov 4  }
  0x23   :  { %33 = dma.hbm_to_vmem [thread:$0]  %s256_s1, 128, %s28_s24, [#allocation6], %s201_s0, %s201_s0, %s202_s5  }
  0x24   :  { %191 = dma.done.wait [#allocation3], 256  }
  0x25   :  { %192 = vsyncadd [#allocation3], 4294967040 }
  0x26   :  { %193 = dma.done.wait [#allocation6], 128  }
  0x27   :  { %194 = vsyncadd [#allocation6], 4294967168  ;;  %v45_v0 = vld [vmem:[#allocation2] sm:$0xff]  ;;  %v46_v1 = vld [vmem:[#allocation2 + $0x8] sm:$0xff]  ;;  %s203_s1 = smov [#allocation7]  }
  0x28   :  { %v57_v2 = vand.u32 2147483647, %v45_v0  ;;  %v58_v3 = vand.u32 2147483647, %v46_v1  ;;  %v106_v11 = vld [vmem:[#allocation5] sm:$0xff]   ;;  %v51_v18 = vmax.f32 %v45_v0, 0.0 }
  0x29   :  { %v107_v14 = vunpack.c.l.bf16 %v106_v11  ;;  %v108_v16 = vunpack.c.h.bf16 %v106_v11  ;;  %v52_v22 = vmax.f32 %v46_v1, 0.0  ;;  %s95_s8 = sshll.u32 %s203_s1, 4  ;;  %s96_s8 = int_to_ptr.vmem [resolvable:$true] %s95_s8 }
  0x2a   :  { %v59_v4 = vsub.f32 0.0, %v57_v2  ;;  %v60_v5 = vsub.f32 0.0, %v58_v3  ;;  %s169_s9 = scalar_lea.vmem %s96_s8, 128  ;;  %p174_p3 = scmp.lt.s32.totalorder %s96_s8, %s96_s8 }
  0x2b   :  { %v53_v19 = vmul.f32 %v107_v14, %v45_v0  ;;  %v54_v23 = vmul.f32 %v108_v16, %v46_v1  ;;  %p170_p2 = scmp.ne.s32.totalorder %s96_s8, %s169_s9  ;;  %p175_p4 = scmp.lt.s32.totalorder %s169_s9, %s169_s9 }
  0x2c   :  { %v61_v6 = vmul.f32 1.442695, %v59_v4  ;;  %v63_v7 = vmul.f32 1.442695, %v60_v5 }
  0x2d   :  { %v55_v27 = vsub.f32 %v51_v18, %v53_v19  ;;  %v56_v30 = vsub.f32 %v52_v22, %v54_v23  ;;  %p176_p5 = por %p175_p4, %p174_p3 }
  0x2e   :  { %117 = vpow2.f32 %v61_v6 }
  0x2f   :  { %119 = vpow2.f32 %v63_v7  ;;  %p177_p6 = pnand %p176_p5, %p170_p2 }
  0x38   :  { %v118_v8 = vpop.eup %117 }
  0x39   :  { %v120_v9 = vpop.eup %119  ;;  %v65_v10 = vadd.f32 1.0, %v118_v8  ;;  %v68_v13 = vmul.f32 -0.5, %v118_v8  ;;  %v71_v20 = vand.u32 2147483647, %v118_v8 }
  0x3a   :  { %v74_v12 = vadd.f32 1.0, %v120_v9  ;;  %v77_v15 = vmul.f32 -0.5, %v120_v9  ;;  %v80_v24 = vand.u32 2147483647, %v120_v9 }
  0x3b   :  { %121 = vlog2.f32 %v65_v10  ;;  %v69_v17 = vadd.f32 1.0, %v68_v13  ;;  %vm72_vm0 = vcmp.lt.f32.partialorder %v71_v20, 0.0004427343 }
  0x3c   :  { %123 = vlog2.f32 %v74_v12  ;;  %v78_v21 = vadd.f32 1.0, %v77_v15  ;;  %vm81_vm1 = vcmp.lt.f32.partialorder %v80_v24, 0.0004427343 }
  0x3d   :  { %v70_v25 = vmul.f32 %v118_v8, %v69_v17 }
  0x3e   :  { %v79_v28 = vmul.f32 %v120_v9, %v78_v21 }
  0x45   :  { %v122_v26 = vpop.eup %121 }
  0x46   :  { %v124_v29 = vpop.eup %123  ;;  %v67_v31 = vmul.f32 0.6931472, %v122_v26 }
  0x47   :  { %v76_v32 = vmul.f32 0.6931472, %v124_v29 }
  0x48   :  { %v73_v33 = vsel %vm72_vm0, %v70_v25, %v67_v31 }
  0x49   :  { %v82_v34 = vsel %vm81_vm1, %v79_v28, %v76_v32  ;;  %v83_v35 = vadd.f32 %v73_v33, %v55_v27 }
  0x4a   :  { %v84_v36 = vadd.f32 %v82_v34, %v56_v30 }
  0x4c   :  { %v86_v37 = vadd.f32 %v84_v36, %v83_v35 }
  0x4e   :  { %88 = vst [vmem:[#allocation7] sm:$0xff] %v86_v37 }
  0x4f   :  { %180 = shalt.err (!%p177_p6)
}
  0x50   :  { %s181_s12 = scalar_lea.hbm %s257_s2, 128 }
  0x51   :  { %p182_p7 = scmp.ne.s32.totalorder %s257_s2, %s181_s12  ;;  %p185_p8 = scmp.lt.u32.totalorder %s181_s12, %s257_s2 }
  0x53   :  { %p187_p9 = pnand %p185_p8, %p182_p7 }
  0x55   :  { %190 = shalt.err (!%p187_p9)
}
  0x56   :  { %98 = dma.vmem_to_hbm [thread:$0]  %s96_s8, 128, %s257_s2, [#allocation4]  }
  0x57   :  { %195 = dma.done.wait [#allocation4], 128  }
  0x58   :  { %196 = vsyncadd [#allocation4], 4294967168 }
  0x59   :  { %102 = vsyncpa [#allocation3], 1 }
  0x5a   :  { %103 = vsyncpa [#allocation6], 1 }
  0x5b   :  { %104 = vsyncpa [#allocation4], 1 }

</bundles_post_ra>
